<compile_context>
chip_gen: v7x
topology: tpu7x:2x2x1
jax: 0.10.0
libtpu: 0.0.40
codegen_flags: <defaults>
</compile_context>

<pallas_src>
import math
import functools

import jax
import jax.numpy as jnp
from jax.experimental import pallas as pl
from jax.experimental.pallas import tpu as pltpu


def _round_up(x, m):
    return (x + m - 1) // m * m


def _gelu_exact(x):
    # nn.GELU() default is the exact (erf) formulation. Keep in f32.
    return 0.5 * x * (1.0 + jax.lax.erf(x * (1.0 / math.sqrt(2.0))))


# -----------------------------------------------------------------------------
# Kernel
# -----------------------------------------------------------------------------
def mlp_kernel(x_ref, w1_ref, b1_ref, w2_ref, b2_ref, o_ref, acc_ref):
    # Grid = (M tiles, H chunks).
    # x_ref:   (TM, E_pad)   activation tile (original dtype; cast in-kernel)
    # w1_ref:  (E_pad, TH)   fc_1 weight chunk (compute dtype, already W^T)
    # b1_ref:  (1, TH)       fc_1 bias chunk (f32)
    # w2_ref:  (TH, E_pad)   fc_2 weight chunk (compute dtype, already W^T)
    # b2_ref:  (1, E_pad)    fc_2 bias (f32, resident)
    # o_ref:   (TM, E_pad)   output tile (resident across the H axis)
    # acc_ref: (TM, E_pad)   f32 accumulator scratch
    k = pl.program_id(1)

    @pl.when(k == 0)
    def _init():
        # Fold the fc_2 bias into the accumulator init (saves a VPU pass).
        acc_ref[...] = jnp.broadcast_to(b2_ref[...], acc_ref.shape)

    # In-kernel cast of the activation tile (VPU work hidden under the MXU).
    x = x_ref[...].astype(w1_ref.dtype)
    # fc_1 chunk: low-precision operands, f32 accumulation on the MXU.
    h = jnp.dot(x, w1_ref[...], preferred_element_type=jnp.float32) + b1_ref[...]
    # Exact (erf) GELU in f32. If profiling ever shows the VALU slot binding
    # (tiny E), switch to the tanh approximation so it lowers to the EUP slot.
    h = _gelu_exact(h)
    # TODO(synk): Dropout(p=0.1) is identity in eval mode; training-mode masking
    # would use pltpu.prng_seed / pltpu.prng_random_bits here.
    acc_ref[...] += jnp.dot(h.astype(w2_ref.dtype), w2_ref[...],
                            preferred_element_type=jnp.float32)

    @pl.when(k == pl.num_programs(1) - 1)
    def _finalize():
        o_ref[...] = acc_ref[...].astype(o_ref.dtype)


# -----------------------------------------------------------------------------
# One-time parameter preparation (hoisted out of the forward path)
# -----------------------------------------------------------------------------
def _vmem_capacity_bytes():
    try:
        return int(pltpu.get_tpu_info().vmem_capacity_bytes)
    except Exception:
        return 64 * 1024 * 1024  # conservative (v7x per-TensorCore VMEM)


def _vmem_needed(tm, e_pad, th, xbytes, cbytes, obytes, n_h_chunks):
    wbuf = 1 if n_h_chunks == 1 else 2  # Buffered(1) when resident, else streamed
    need = 0
    need += 2 * tm * e_pad * xbytes           # x tile, double-buffered
    need += 2 * tm * e_pad * obytes           # out tile, double-buffered
    need += wbuf * e_pad * th * cbytes        # w1 chunk
    need += wbuf * th * e_pad * cbytes        # w2 chunk
    need += wbuf * th * 4                     # b1 chunk (f32)
    need += e_pad * 4                         # b2 (single buffer)
    need += tm * e_pad * 4                    # f32 accumulator scratch
    need += tm * th * (4 + cbytes)            # hidden f32 + low-precision copy
    return need


def prepare_mlp_params(w1, b1, w2, b2, *, x_dtype=jnp.float32, out_dtype=None,
                       block_m=None, use_bf16_matmul=True):
    """Pad + cast the MLP weights once. w1: [E, H], b1: [H], w2: [H, E], b2: [E]."""
    E, H = w1.shape
    out_dtype = x_dtype if out_dtype is None else out_dtype
    compute_dtype = jnp.bfloat16 if use_bf16_matmul else jnp.float32

    xbytes = jnp.dtype(x_dtype).itemsize
    cbytes = jnp.dtype(compute_dtype).itemsize
    obytes = jnp.dtype(out_dtype).itemsize

    E_pad = _round_up(max(E, 128), 128)
    H_pad = _round_up(max(H, 128), 128)

    # Generation-aware VMEM budget (~75% of physical: ~96 MiB v5e/v6e, ~48 MiB v7x).
    budget = int(0.75 * _vmem_capacity_bytes())

    # Row tile: larger on 128-MiB-VMEM parts (fewer grid steps), 256 otherwise.
    if block_m is None:
        block_m = 512 if budget >= 80 * 1024 * 1024 else 256
    tm = max(8, _round_up(block_m, 8))

    # Hidden-dim chunk TH: largest lane-aligned chunk fitting the budget
    # (bounds VMEM independently of H; relieves v5e store-slot pressure).
    th = None
    for cand in sorted({H_pad, 8192, 4096, 2048, 1024, 512, 256, 128}, reverse=True):
        if cand > H_pad:
            continue
        h_eff = _round_up(H_pad, cand)
        if _vmem_needed(tm, E_pad, cand, xbytes, cbytes, obytes,
                        h_eff // cand) <= budget:
            th = cand
            break
    if th is None:
        raise ValueError(
            f"MLP working set does not fit the VMEM budget ({budget} B) even with "
            f"TH=128 at TM={tm}; reduce block_m.")
    H_eff = _round_up(H_pad, th)
    n_h_chunks = H_eff // th

    needed = _vmem_needed(tm, E_pad, th, xbytes, cbytes, obytes, n_h_chunks)
    assert needed <= budget, (needed, budget)
    vmem_limit = int(min(budget, max(int(1.5 * needed), 32 * 1024 * 1024)))

    # One-time pad + cast (zero padding is exact: padded features/hidden units
    # contribute nothing; padded outputs are sliced off).
    w1p = jnp.pad(w1, ((0, E_pad - E), (0, H_eff - H))).astype(compute_dtype)
    w2p = jnp.pad(w2, ((0, H_eff - H), (0, E_pad - E))).astype(compute_dtype)
    b1p = jnp.pad(b1, (0, H_eff - H)).astype(jnp.float32).reshape(1, H_eff)
    b2p = jnp.pad(b2, (0, E_pad - E)).astype(jnp.float32).reshape(1, E_pad)

    arrays = (w1p, b1p, w2p, b2p)
    config = dict(embed_dim=int(E), tile_m=int(tm), tile_h=int(th),
                  vmem_limit=int(vmem_limit))
    return arrays, config


# -----------------------------------------------------------------------------
# Forward
# -----------------------------------------------------------------------------
def _spec(block_shape, index_map, *, buffers=None):
    if buffers is None:
        return pl.BlockSpec(block_shape, index_map)
    try:
        return pl.BlockSpec(block_shape, index_map, pipeline_mode=pl.Buffered(buffers))
    except (TypeError, AttributeError):  # older jax without pipeline_mode
        return pl.BlockSpec(block_shape, index_map)


@functools.partial(jax.jit,
                   static_argnames=("embed_dim", "tile_m", "tile_h", "vmem_limit"))
def _mlp_forward_impl(x, w1p, b1p, w2p, b2p, *, embed_dim, tile_m, tile_h, vmem_limit):
    B, S, E = x.shape
    assert E == embed_dim
    E_pad, H_eff = w1p.shape
    M = B * S
    out_dtype = x.dtype

    # Clamp the row tile for tiny problems; keep it sublane-aligned.
    tm = min(tile_m, _round_up(M, 8))
    n_m_tiles = pl.cdiv(M, tm)      # ragged last tile: OOB rows are garbage that
    n_h_chunks = H_eff // tile_h    # stays row-local and is dropped on write-back.

    x2d = x.reshape(M, E)
    if E_pad != E:
        x2d = jnp.pad(x2d, ((0, 0), (0, E_pad - E)))  # exact (zero features)

    w_buffers = 1 if n_h_chunks == 1 else None  # resident vs streamed weights

    cost = pl.CostEstimate(
        flops=4 * M * E_pad * H_eff,
        transcendentals=M * H_eff,
        bytes_accessed=(x2d.size * x2d.dtype.itemsize
                        + w1p.size * w1p.dtype.itemsize
                        + w2p.size * w2p.dtype.itemsize
                        + b1p.size * 4 + b2p.size * 4
                        + M * E_pad * jnp.dtype(out_dtype).itemsize),
    )

    out2d = pl.pallas_call(
        mlp_kernel,
        out_shape=jax.ShapeDtypeStruct((M, E_pad), out_dtype),
        grid=(n_m_tiles, n_h_chunks),
        in_specs=[
            _spec((tm, E_pad), lambda i, k: (i, 0)),                         # x
            _spec((E_pad, tile_h), lambda i, k: (0, k), buffers=w_buffers),  # w1
            _spec((1, tile_h), lambda i, k: (0, k), buffers=w_buffers),      # b1
            _spec((tile_h, E_pad), lambda i, k: (k, 0), buffers=w_buffers),  # w2
            _spec((1, E_pad), lambda i, k: (0, 0), buffers=1),               # b2
        ],
        out_specs=_spec((tm, E_pad), lambda i, k: (i, 0)),
        scratch_shapes=[pltpu.VMEM((tm, E_pad), jnp.float32)],
        compiler_params=pltpu.CompilerParams(
            dimension_semantics=("parallel", "arbitrary"),
            vmem_limit_bytes=vmem_limit,
        ),
        cost_estimate=cost,
    )(x2d, w1p, b1p, w2p, b2p)

    out = out2d[:, :E] if E_pad != E else out2d
    return out.reshape(B, S, E)


def mlp_forward(x, params):
    """x: [B, S, E]; params: output of prepare_mlp_params."""
    (w1p, b1p, w2p, b2p), config = params
    return _mlp_forward_impl(x, w1p, b1p, w2p, b2p, **config)


# -----------------------------------------------------------------------------
# References
# -----------------------------------------------------------------------------
def reference_mlp_f32(x, w1, b1, w2, b2):
    # Exact f32 reference (matches the PyTorch module in eval mode).
    h = jnp.einsum("bse,eh->bsh", x, w1) + b1
    h = _gelu_exact(h)
    return jnp.einsum("bsh,he->bse", h, w2) + b2


def reference_mlp_matched(x, w1, b1, w2, b2):
    # Same bf16-operand / f32-accumulate recipe as the kernel (tight check).
    B, S, E = x.shape
    xb = x.reshape(-1, E).astype(jnp.bfloat16)
    h = jnp.dot(xb, w1.astype(jnp.bfloat16), preferred_element_type=jnp.float32) + b1
    h = _gelu_exact(h)
    out = jnp.dot(h.astype(jnp.bfloat16), w2.astype(jnp.bfloat16),
                  preferred_element_type=jnp.float32) + b2
    return out.reshape(B, S, -1).astype(x.dtype)


if __name__ == "__main__":
    # config: embed_dim=32, mlp_dim=32 -> hidden = 4 * 32 = 128
    B, S, E, MLP_DIM = 2, 8, 32, 32
    H = 4 * MLP_DIM

    key = jax.random.PRNGKey(0)
    kx, kw1, kb1, kw2, kb2 = jax.random.split(key, 5)

    x = jax.random.normal(kx, (B, S, E), dtype=jnp.float32)

    # Deterministic init mimicking nn.Linear's uniform(-1/sqrt(fan_in), 1/sqrt(fan_in)).
    lim1 = 1.0 / math.sqrt(E)
    w1 = jax.random.uniform(kw1, (E, H), minval=-lim1, maxval=lim1, dtype=jnp.float32)
    b1 = jax.random.uniform(kb1, (H,), minval=-lim1, maxval=lim1, dtype=jnp.float32)
    lim2 = 1.0 / math.sqrt(H)
    w2 = jax.random.uniform(kw2, (H, E), minval=-lim2, maxval=lim2, dtype=jnp.float32)
    b2 = jax.random.uniform(kb2, (E,), minval=-lim2, maxval=lim2, dtype=jnp.float32)

    # One-time weight preprocessing (outside the forward path).
    params = prepare_mlp_params(w1, b1, w2, b2, x_dtype=x.dtype)

    out = mlp_forward(x, params)
    jax.block_until_ready(out)
    assert out.shape == (B, S, E)

    # Tight check against a precision-matched (bf16 operand / f32 accum) reference.
    ref_matched = reference_mlp_matched(x, w1, b1, w2, b2)
    assert bool(jnp.allclose(out, ref_matched, atol=1e-4, rtol=1e-4)), (
        "kernel mismatch vs matched-precision reference: "
        f"max abs diff = {float(jnp.max(jnp.abs(out - ref_matched)))}"
    )

    # Loose check against the exact f32 module semantics (bf16 MXU rounding).
    ref_f32 = reference_mlp_f32(x, w1, b1, w2, b2)
    assert bool(jnp.allclose(out, ref_f32, atol=5e-2, rtol=5e-2)), (
        "kernel mismatch vs f32 reference: "
        f"max abs diff = {float(jnp.max(jnp.abs(out - ref_f32)))}"
    )

    print("KERNEL_OK")
</pallas_src>

<mosaic_0001>
module attributes {stable_mosaic.version = 11 : i64} {
  func.func @mlp_kernel(%arg0: i32, %arg1: i32, %arg2: memref<16x128xf32, #tpu.memory_space<vmem>>, %arg3: memref<128x128xbf16, #tpu.memory_space<vmem>>, %arg4: memref<1x128xf32, #tpu.memory_space<vmem>>, %arg5: memref<128x128xbf16, #tpu.memory_space<vmem>>, %arg6: memref<1x128xf32, #tpu.memory_space<vmem>>, %arg7: memref<16x128xf32, #tpu.memory_space<vmem>>, %arg8: memref<16x128xf32, #tpu.memory_space<vmem>>) attributes {dimension_semantics = [#tpu.dimension_semantics<parallel>, #tpu.dimension_semantics<arbitrary>], iteration_bounds = array<i64: 1, 1>, scalar_prefetch = 0 : i64, scratch_operands = 1 : i64, tpu.core_type = #tpu.core_type<tc>, window_params = [{transform_indices = @transform_0, window_bounds = array<i64: 16, 128>}, {pipeline_mode = #tpu.pipeline_mode<synchronous>, transform_indices = @transform_1, window_bounds = array<i64: 128, 128>}, {pipeline_mode = #tpu.pipeline_mode<synchronous>, transform_indices = @transform_2, window_bounds = array<i64: 1, 128>}, {pipeline_mode = #tpu.pipeline_mode<synchronous>, transform_indices = @transform_3, window_bounds = array<i64: 128, 128>}, {pipeline_mode = #tpu.pipeline_mode<synchronous>, transform_indices = @transform_4, window_bounds = array<i64: 1, 128>}, {transform_indices = @transform_5, window_bounds = array<i64: 16, 128>}]} {
    %c0_i32 = arith.constant 0 : i32
    %0 = arith.cmpi eq, %arg1, %c0_i32 : i32
    %1 = arith.extui %0 : i1 to i32
    %c0_i32_0 = arith.constant 0 : i32
    %2 = arith.cmpi ne, %1, %c0_i32_0 : i32
    scf.if %2 {
      %c0_18 = arith.constant 0 : index
      %c0_19 = arith.constant 0 : index
      %27 = vector.load %arg6[%c0_18, %c0_19] : memref<1x128xf32, #tpu.memory_space<vmem>>, vector<1x128xf32>
      %28 = vector.shape_cast %27 : vector<1x128xf32> to vector<1x128xf32>
      %29 = vector.broadcast %28 : vector<1x128xf32> to vector<16x128xf32>
      %c0_20 = arith.constant 0 : index
      %c0_21 = arith.constant 0 : index
      %30 = vector.load %arg8[%c0_20, %c0_21] : memref<16x128xf32, #tpu.memory_space<vmem>>, vector<16x128xf32>
      tpu.vector_store %arg8[%c0_20, %c0_21], %29 {strides = array<i32>} : memref<16x128xf32, #tpu.memory_space<vmem>>, vector<16x128xf32>,
    } else {
    }
    %c0 = arith.constant 0 : index
    %c0_1 = arith.constant 0 : index
    %3 = vector.load %arg2[%c0, %c0_1] : memref<16x128xf32, #tpu.memory_space<vmem>>, vector<16x128xf32>
    %4 = arith.truncf %3 : vector<16x128xf32> to vector<16x128xbf16>
    %c0_2 = arith.constant 0 : index
    %c0_3 = arith.constant 0 : index
    %5 = vector.load %arg3[%c0_2, %c0_3] : memref<128x128xbf16, #tpu.memory_space<vmem>>, vector<128x128xbf16>
    %cst = arith.constant dense<0.000000e+00> : vector<16x128xf32>
    %6 = tpu.matmul %4, %5, %cst {dimension_numbers = #tpu.dot_dimension_numbers<[1], [0], [0], [1], [0, 0, 1, 1], [], []>} : vector<16x128xbf16>, vector<128x128xbf16>, vector<16x128xf32> -> vector<16x128xf32>
    %c0_4 = arith.constant 0 : index
    %c0_5 = arith.constant 0 : index
    %7 = vector.load %arg4[%c0_4, %c0_5] : memref<1x128xf32, #tpu.memory_space<vmem>>, vector<1x128xf32>
    %8 = vector.broadcast %7 : vector<1x128xf32> to vector<16x128xf32>
    %9 = arith.addf %6, %8 : vector<16x128xf32>
    %cst_6 = arith.constant 5.000000e-01 : f32
    %10 = vector.broadcast %cst_6 : f32 to vector<16x128xf32>
    %11 = arith.mulf %10, %9 : vector<16x128xf32>
    %cst_7 = arith.constant 0.707106769 : f32
    %12 = vector.broadcast %cst_7 : f32 to vector<16x128xf32>
    %13 = arith.mulf %9, %12 : vector<16x128xf32>
    %14 = math.erf %13 : vector<16x128xf32>
    %cst_8 = arith.constant 1.000000e+00 : f32
    %15 = vector.broadcast %cst_8 : f32 to vector<16x128xf32>
    %16 = arith.addf %15, %14 : vector<16x128xf32>
    %17 = arith.mulf %11, %16 : vector<16x128xf32>
    %c0_9 = arith.constant 0 : index
    %c0_10 = arith.constant 0 : index
    %18 = vector.load %arg8[%c0_9, %c0_10] : memref<16x128xf32, #tpu.memory_space<vmem>>, vector<16x128xf32>
    %19 = arith.truncf %17 : vector<16x128xf32> to vector<16x128xbf16>
    %c0_11 = arith.constant 0 : index
    %c0_12 = arith.constant 0 : index
    %20 = vector.load %arg5[%c0_11, %c0_12] : memref<128x128xbf16, #tpu.memory_space<vmem>>, vector<128x128xbf16>
    %cst_13 = arith.constant dense<0.000000e+00> : vector<16x128xf32>
    %21 = tpu.matmul %19, %20, %cst_13 {dimension_numbers = #tpu.dot_dimension_numbers<[1], [0], [0], [1], [0, 0, 1, 1], [], []>} : vector<16x128xbf16>, vector<128x128xbf16>, vector<16x128xf32> -> vector<16x128xf32>
    %22 = arith.addf %18, %21 : vector<16x128xf32>
    %c0_14 = arith.constant 0 : index
    %c0_15 = arith.constant 0 : index
    %23 = vector.load %arg8[%c0_14, %c0_15] : memref<16x128xf32, #tpu.memory_space<vmem>>, vector<16x128xf32>
    tpu.vector_store %arg8[%c0_14, %c0_15], %22 {strides = array<i32>} : memref<16x128xf32, #tpu.memory_space<vmem>>, vector<16x128xf32>,
    %c0_i32_16 = arith.constant 0 : i32
    %24 = arith.cmpi eq, %arg1, %c0_i32_16 : i32
    %25 = arith.extui %24 : i1 to i32
    %c0_i32_17 = arith.constant 0 : i32
    %26 = arith.cmpi ne, %25, %c0_i32_17 : i32
    scf.if %26 {
      %c0_18 = arith.constant 0 : index
      %c0_19 = arith.constant 0 : index
      %27 = vector.load %arg8[%c0_18, %c0_19] : memref<16x128xf32, #tpu.memory_space<vmem>>, vector<16x128xf32>
      %c0_20 = arith.constant 0 : index
      %c0_21 = arith.constant 0 : index
      %28 = vector.load %arg7[%c0_20, %c0_21] : memref<16x128xf32, #tpu.memory_space<vmem>>, vector<16x128xf32>
      tpu.vector_store %arg7[%c0_20, %c0_21], %27 {strides = array<i32>} : memref<16x128xf32, #tpu.memory_space<vmem>>, vector<16x128xf32>,
    } else {
    }
    return
  }
  func.func @transform_0(%arg0: i32, %arg1: i32) -> (i32, i32) {
    %c0_i32 = arith.constant 0 : i32
    %c0_i32_0 = arith.constant 0 : i32
    return %arg0, %c0_i32 : i32, i32
  }
  func.func @transform_1(%arg0: i32, %arg1: i32) -> (i32, i32) {
    %c0_i32 = arith.constant 0 : i32
    %c0_i32_0 = arith.constant 0 : i32
    return %c0_i32, %arg1 : i32, i32
  }
  func.func @transform_2(%arg0: i32, %arg1: i32) -> (i32, i32) {
    %c0_i32 = arith.constant 0 : i32
    %c0_i32_0 = arith.constant 0 : i32
    return %c0_i32, %arg1 : i32, i32
  }
  func.func @transform_3(%arg0: i32, %arg1: i32) -> (i32, i32) {
    %c0_i32 = arith.constant 0 : i32
    %c0_i32_0 = arith.constant 0 : i32
    return %arg1, %c0_i32 : i32, i32
  }
  func.func @transform_4(%arg0: i32, %arg1: i32) -> (i32, i32) {
    %c0_i32 = arith.constant 0 : i32
    %c0_i32_0 = arith.constant 0 : i32
    %c0_i32_1 = arith.constant 0 : i32
    return %c0_i32, %c0_i32_0 : i32, i32
  }
  func.func @transform_5(%arg0: i32, %arg1: i32) -> (i32, i32) {
    %c0_i32 = arith.constant 0 : i32
    %c0_i32_0 = arith.constant 0 : i32
    return %arg0, %c0_i32 : i32, i32
  }
}

</mosaic_0001>

<bundles_post_ra>
// kernel: _mlp_forward_impl.1
= control target key start
LH: loop header
LB: loop body
LE: loop exit
PB: predicated region body
PF: predicated region fallthrough
CT: control target
= control target key end

     0   :  { %10 = vsyncpa [#allocation4], 0  ;;  %s540_s0 = inlined_call_operand.vmem [shape: f32[16,128], index: 0, kind: input, shape index: {}]   ;;  %s541_s1 = inlined_call_operand.hbm [shape: bf16[128,128], index: 1, kind: input, shape index: {}]   ;;  %s542_s2 = inlined_call_operand.vmem [shape: f32[1,128], index: 2, kind: input, shape index: {}]   ;;  %s543_s3 = inlined_call_operand.hbm [shape: bf16[128,128], index: 3, kind: input, shape index: {}]   ;;  %s544_s4 = inlined_call_operand.vmem [shape: f32[1,128], index: 4, kind: input, shape index: {}]   ;;  %s545_s5 = inlined_call_operand.vmem [shape: f32[16,128], index: 5, kind: output, shape index: {}]  }
   0x1   :  { %11 = vsyncpa [#allocation6], 0  ;;  %s462_s18 = smov [#allocation3]   ;;  %s414_s22 = scalar_lea.hbm %s541_s1, 1024 }
   0x2   :  { %s19_s19 = sshll.u32 %s462_s18, 4  ;;  %p415_p0 = scmp.ne.s32.totalorder %s541_s1, %s414_s22  ;;  %s20_s19 = int_to_ptr.vmem [resolvable:$true] %s19_s19 }
   0x3   :  { %p418_p1 = scmp.lt.u32.totalorder %s414_s22, %s541_s1 }
   0x5   :  { %p420_p2 = pnand %p418_p1, %p415_p0 }
   0x7   :  { %423 = shalt.err (!%p420_p2)
}
   0x8   :  { %s424_s27 = scalar_lea.vmem %s20_s19, 1024  ;;  %p429_p4 = scmp.lt.s32.totalorder %s20_s19, %s20_s19 }
   0x9   :  { %p425_p3 = scmp.ne.s32.totalorder %s20_s19, %s424_s27  ;;  %p430_p5 = scmp.lt.s32.totalorder %s424_s27, %s424_s27 }
   0xb   :  { %p431_p6 = por %p430_p5, %p429_p4 }
   0xd   :  { %p432_p7 = pnand %p431_p6, %p425_p3 }
   0xf   :  { %435 = shalt.err (!%p432_p7)
}
  0x10   :  { %s463_s28 = smov 64   ;;  %s464_s29 = smov 4  }
  0x11   :  { %25 = dma.hbm_to_vmem [thread:$0]  %s541_s1, 1024, %s20_s19, [#allocation4], %s463_s28, %s463_s28, %s464_s29  }
  0x12   :  { %s465_s7 = smov [#allocation5]   ;;  %s436_s11 = scalar_lea.hbm %s543_s3, 1024 }
  0x13   :  { %s33_s8 = sshll.u32 %s465_s7, 4  ;;  %p437_p8 = scmp.ne.s32.totalorder %s543_s3, %s436_s11  ;;  %s34_s8 = int_to_ptr.vmem [resolvable:$true] %s33_s8 }
  0x14   :  { %p440_p9 = scmp.lt.u32.totalorder %s436_s11, %s543_s3 }
  0x16   :  { %p442_p10 = pnand %p440_p9, %p437_p8 }
  0x18   :  { %445 = shalt.err (!%p442_p10)
}
  0x19   :  { %s446_s16 = scalar_lea.vmem %s34_s8, 1024  ;;  %p451_p12 = scmp.lt.s32.totalorder %s34_s8, %s34_s8 }
  0x1a   :  { %p447_p11 = scmp.ne.s32.totalorder %s34_s8, %s446_s16  ;;  %p452_p13 = scmp.lt.s32.totalorder %s446_s16, %s446_s16 }
  0x1c   :  { %p453_p0 = por %p452_p13, %p451_p12 }
  0x1e   :  { %p454_p1 = pnand %p453_p0, %p447_p11 }
  0x20   :  { %457 = shalt.err (!%p454_p1)
}
  0x21   :  { %39 = dma.hbm_to_vmem [thread:$0]  %s543_s3, 1024, %s34_s8, [#allocation6], %s463_s28, %s463_s28, %s464_s29  }
  0x22   :  { %458 = dma.done.wait [#allocation4], 1024  }
  0x23   :  { %459 = vsyncadd [#allocation4], 4294966272 }
  0x24   :  { %460 = dma.done.wait [#allocation6], 1024  }
  0x25   :  { %461 = vsyncadd [#allocation6], 4294966272  ;;  %v466_v0 = vmov 0.0   ;;  %vm467_vm0 = vmmov 0   ;;  %v394_v1 = vld [vmem:[#allocation3] sm:$0xff]   ;;  %v395_v2 = vld [vmem:[#allocation3 + $0x8] sm:$0xff]  }
  0x26   :  { %348 = vmatprep.subr.bf16.mxu0 %v466_v0  ;;  %364 = vmatprep.mubr.msk.bf16.mxu0 %vm467_vm0, %v466_v0  ;;  %v396_v3 = vld [vmem:[#allocation3 + $0x10] sm:$0xff]   ;;  %v402_v4 = vld [vmem:[#allocation5] sm:$0xff]   ;;  %v397_v5 = vld [vmem:[#allocation3 + $0x18] sm:$0xff]  }
  0x27   :  { %368 = vmatprep.subr.bf16.mxu1 %v466_v0  ;;  %384 = vmatprep.mubr.msk.bf16.mxu1 %vm467_vm0, %v466_v0  ;;  %v403_v6 = vld [vmem:[#allocation5 + $0x8] sm:$0xff]   ;;  %v398_v7 = vld [vmem:[#allocation3 + $0x20] sm:$0xff]   ;;  %v400_v9 = vld [vmem:[#allocation3 + $0x30] sm:$0xff]  }
  0x28   :  { %349 = vmatpush3.bf16.msra.mxu0 %v394_v1  ;;  %369 = vmatpush3.bf16.msra.mxu1 %v402_v4  ;;  %v399_v8 = vld [vmem:[#allocation3 + $0x28] sm:$0xff]   ;;  %v401_v10 = vld [vmem:[#allocation3 + $0x38] sm:$0xff]   ;;  %v62_v11 = vld [vmem:[%s540_s0] sm:$0xff] }
  0x29   :  { %350 = vmatprep.subr.bf16.mxu0 %v466_v0  ;;  %370 = vmatprep.subr.bf16.mxu1 %v466_v0  ;;  %v63_v12 = vld [vmem:[%s540_s0 + $0x8] sm:$0xff]  ;;  %v404_v14 = vld [vmem:[#allocation5 + $0x10] sm:$0xff]   ;;  %v405_v15 = vld [vmem:[#allocation5 + $0x18] sm:$0xff]  }
  0x2a   :  { %v64_v13 = vpack.c.bf16 %v63_v12, %v62_v11  ;;  %v406_v16 = vld [vmem:[#allocation5 + $0x20] sm:$0xff]   ;;  %v407_v17 = vld [vmem:[#allocation5 + $0x28] sm:$0xff]   ;;  %v408_v18 = vld [vmem:[#allocation5 + $0x30] sm:$0xff]  }
  0x2b   :  { %v409_v19 = vld [vmem:[#allocation5 + $0x38] sm:$0xff]   ;;  %v313_v20 = vld [vmem:[%s542_s2] ss:$0 sm:$0xff] }
  0x2c   :  { %351 = vmatpush3.bf16.msra.mxu0 %v395_v2  ;;  %371 = vmatpush3.bf16.msra.mxu1 %v403_v6  ;;  %v312_v38 = vld [vmem:[%s544_s4] ss:$0 sm:$0xff] }
  0x2d   :  { %352 = vmatprep.subr.bf16.mxu0 %v466_v0  ;;  %372 = vmatprep.subr.bf16.mxu1 %v466_v0 }
  0x30   :  { %353 = vmatpush3.bf16.msra.mxu0 %v396_v3  ;;  %373 = vmatpush3.bf16.msra.mxu1 %v404_v14 }
  0x31   :  { %354 = vmatprep.subr.bf16.mxu0 %v466_v0  ;;  %374 = vmatprep.subr.bf16.mxu1 %v466_v0 }
  0x34   :  { %355 = vmatpush3.bf16.msra.mxu0 %v397_v5  ;;  %375 = vmatpush3.bf16.msra.mxu1 %v405_v15 }
  0x35   :  { %356 = vmatprep.subr.bf16.mxu0 %v466_v0  ;;  %376 = vmatprep.subr.bf16.mxu1 %v466_v0 }
  0x38   :  { %357 = vmatpush3.bf16.msra.mxu0 %v398_v7  ;;  %377 = vmatpush3.bf16.msra.mxu1 %v406_v16 }
  0x39   :  { %358 = vmatprep.subr.bf16.mxu0 %v466_v0  ;;  %378 = vmatprep.subr.bf16.mxu1 %v466_v0 }
  0x3c   :  { %359 = vmatpush3.bf16.msra.mxu0 %v399_v8  ;;  %379 = vmatpush3.bf16.msra.mxu1 %v407_v17 }
  0x3d   :  { %360 = vmatprep.subr.bf16.mxu0 %v466_v0  ;;  %380 = vmatprep.subr.bf16.mxu1 %v466_v0 }
  0x40   :  { %361 = vmatpush3.bf16.msra.mxu0 %v400_v9  ;;  %381 = vmatpush3.bf16.msra.mxu1 %v408_v18 }
  0x41   :  { %362 = vmatprep.subr.bf16.mxu0 %v466_v0  ;;  %382 = vmatprep.subr.bf16.mxu1 %v466_v0 }
  0x44   :  { %363 = vmatpush3.bf16.msra.mxu0 %v401_v10  ;;  %383 = vmatpush3.bf16.msra.mxu1 %v409_v19 }
  0x47   :  { %365 = vmatmul.mubr.bf16.vlgmr.msra.gmra.mrb[0].mxu0 %v64_v13 }
 0x11a   :  { %v170_v21 = vpop.f32.mrb[0].mxu0 }
 0x11b   :  { %v171_v22 = vadd.f32 %v313_v20, %v170_v21  ;;  %v366_v23 = vpop.f32.mrb[1].mxu0 }
 0x11c   :  { %v173_v24 = vpop.f32.mrb[2].mxu0 }
 0x11d   :  { %v179_v25 = vmul.f32 0.70710677, %v171_v22  ;;  %v174_v26 = vadd.f32 %v313_v20, %v173_v24  ;;  %v367_v27 = vpop.f32.mrb[3].mxu0  ;;  %v177_v32 = vmul.f32 0.5, %v171_v22 }
 0x11f   :  { %410 = verf.f32 %v179_v25  ;;  %v180_v28 = vmul.f32 0.70710677, %v174_v26  ;;  %v178_v33 = vmul.f32 0.5, %v174_v26 }
 0x121   :  { %412 = verf.f32 %v180_v28 }
 0x129   :  { %v411_v29 = vpop.eup %410 }
 0x12a   :  { %v183_v30 = vadd.f32 1.0, %v411_v29 }
 0x12b   :  { %v413_v31 = vpop.eup %412 }
 0x12c   :  { %v184_v34 = vadd.f32 1.0, %v413_v31  ;;  %v185_v35 = vmul.f32 %v183_v30, %v177_v32 }
 0x12e   :  { %v186_v36 = vmul.f32 %v184_v34, %v178_v33 }
 0x130   :  { %v189_v37 = vpack.c.bf16 %v186_v36, %v185_v35 }
 0x132   :  { %385 = vmatmul.mubr.bf16.vlgmr.msra.gmra.mrb[0].mxu1 %v189_v37 }
 0x205   :  { %v288_v39 = vpop.f32.mrb[0].mxu1 }
 0x206   :  { %v295_v40 = vadd.f32 %v312_v38, %v288_v39  ;;  %v386_v41 = vpop.f32.mrb[1].mxu1 }
 0x207   :  { %v291_v42 = vpop.f32.mrb[2].mxu1 }
 0x208   :  { %304 = vst [vmem:[%s545_s5] sm:$0xff] %v295_v40  ;;  %v296_v43 = vadd.f32 %v312_v38, %v291_v42  ;;  %v387_v44 = vpop.f32.mrb[3].mxu1 }
 0x20a   :  { %305 = vst [vmem:[%s545_s5 + $0x8] sm:$0xff] %v296_v43 }
 0x20b   :  { %310 = vsyncpa [#allocation4], 1 }
 0x20c   :  { %311 = vsyncpa [#allocation6], 1 }

</bundles_post_ra>
